<compile_context>
chip_gen: v7x
topology: tpu7x:2x2x1
jax: 0.10.0
libtpu: 0.0.40
codegen_flags: <defaults>
</compile_context>

<pallas_src>
import functools

import numpy as np
import jax
import jax.numpy as jnp
from jax.experimental import pallas as pl
from jax.experimental.pallas import tpu as pltpu


# ----------------------------------------------------------------------------
# Generic fused conv/GEMM kernel
#   out[m, co] = act( sum_ci sum_k X[m + off_k, ci] * W[k*tci + ci, co] + b[co] )
# grid = (row_chunks, Cout tiles, Cin tiles); Cin tiles = reduction (innermost).
# ----------------------------------------------------------------------------
def _gemm_kernel(x_ref, w_ref, b_ref, o_ref, acc_ref, *, offs, act):
    ci = pl.program_id(2)

    @pl.when(ci == 0)
    def _():
        acc_ref[...] = jnp.zeros_like(acc_ref)

    R = acc_ref.shape[0]          # output rows in this chunk
    tci = x_ref.shape[2]          # Cin tile width

    if len(offs) == 1:
        o0 = offs[0]
        acc_ref[...] += jnp.dot(x_ref[0, o0:o0 + R, :], w_ref[0],
                                preferred_element_type=jnp.float32)
    elif tci % 128 == 0:
        # Single MXU contraction with K = KK*tci: concatenate the KK shifted
        # views along the (lane-aligned) channel axis.
        patches = jnp.concatenate([x_ref[0, o:o + R, :] for o in offs], axis=-1)
        acc_ref[...] += jnp.dot(patches, w_ref[0],
                                preferred_element_type=jnp.float32)
    else:
        # Small-channel fallback (lane width not 128-aligned): per-tap matmuls.
        acc = acc_ref[...]
        for k, o in enumerate(offs):
            acc = acc + jnp.dot(x_ref[0, o:o + R, :],
                                w_ref[0, k * tci:(k + 1) * tci, :],
                                preferred_element_type=jnp.float32)
        acc_ref[...] = acc

    @pl.when(ci == pl.num_programs(2) - 1)
    def _():
        out = acc_ref[...] + b_ref[...]          # fused bias (+ folded BN), f32
        if act == "relu":
            out = jnp.maximum(out, 0.0)
        elif act == "sigmoid":
            out = jax.nn.sigmoid(out)
        o_ref[0] = out.astype(o_ref.dtype)


# ----------------------------------------------------------------------------
# Wrapper-side tiling helpers
# ----------------------------------------------------------------------------
def _round_up(a, b):
    return (a + b - 1) // b * b


_TCO_CAP = None


def _tco_cap():
    # 256-wide MXU on v6e / v7x; keep 128 on v5e (4x128^2 MXU).
    global _TCO_CAP
    if _TCO_CAP is None:
        try:
            kind = jax.devices()[0].device_kind.lower()
        except Exception:
            kind = ""
        _TCO_CAP = 128 if ("v5 lite" in kind or "v5e" in kind) else 256
    return _TCO_CAP


def _tile(c, cap):
    """Largest 128-multiple <= cap dividing c, else c itself (never drops channels)."""
    if c <= cap:
        return c
    t = (cap // 128) * 128
    while t >= 128:
        if c % t == 0:
            return t
        t -= 128
    return c


_MAX_ROWS = 512   # target output rows per grid step


def _gemm_core(xf, w_koc, b, act, offs, n_out, tco_cap=None):
    """xf: (rows, Cin) flattened input rows (conv taps = row offsets `offs`);
    w_koc: (KK, Cin, Cout) f32; b: (Cout,) f32.  Returns (n_out, Cout) f32."""
    KK, Cin, Cout = w_koc.shape
    assert KK == len(offs)

    # Pad tiny K (Cin in {1, 3}) to a sublane multiple; zero columns contribute 0.
    if Cin % 8 != 0:
        cpad = _round_up(Cin, 8) - Cin
        xf = jnp.pad(xf, ((0, 0), (0, cpad)))
        w_koc = jnp.pad(w_koc, ((0, 0), (0, cpad), (0, 0)))
        Cin += cpad

    tci = _tile(Cin, 256)
    n_ci = Cin // tci
    tco = _tile(Cout, tco_cap if tco_cap is not None else _tco_cap())
    n_co = Cout // tco

    max_off = max(offs)
    if n_out <= _MAX_ROWS:
        n_ch = 1
        R = _round_up(n_out, 8)
    else:
        n_ch = -(-n_out // _MAX_ROWS)
        R = _round_up(-(-n_out // n_ch), 8)
    R_in = R + max_off

    need = (n_ch - 1) * R + R_in
    if need > xf.shape[0]:
        xf = jnp.pad(xf, ((0, need - xf.shape[0]), (0, 0)))
    xb = xf.astype(jnp.bfloat16)                       # bf16 for MXU / HBM
    if n_ch == 1:
        xc = xb[None, :R_in, :]
    else:                                              # overlapping row chunks
        xc = jnp.stack([xb[c * R: c * R + R_in, :] for c in range(n_ch)], axis=0)

    # Weights: (n_ci, KK*tci, Cout), tap-major inside each Cin tile.
    wr = (w_koc.reshape(KK, n_ci, tci, Cout)
          .transpose(1, 0, 2, 3)
          .reshape(n_ci, KK * tci, Cout)
          .astype(jnp.bfloat16))
    b2 = b.reshape(1, Cout).astype(jnp.float32)

    kernel = functools.partial(_gemm_kernel, offs=tuple(offs), act=act)
    out = pl.pallas_call(
        kernel,
        out_shape=jax.ShapeDtypeStruct((n_ch, R, Cout), jnp.float32),
        grid_spec=pltpu.PrefetchScalarGridSpec(
            num_scalar_prefetch=0,
            grid=(n_ch, n_co, n_ci),
            in_specs=[
                pl.BlockSpec((1, R_in, tci), lambda m, co, ci: (m, 0, ci)),
                pl.BlockSpec((1, KK * tci, tco), lambda m, co, ci: (ci, 0, co)),
                pl.BlockSpec((1, tco), lambda m, co, ci: (0, co)),
            ],
            out_specs=pl.BlockSpec((1, R, tco), lambda m, co, ci: (m, 0, co)),
            scratch_shapes=[pltpu.VMEM((R, tco), jnp.float32)],
        ),
        compiler_params=pltpu.CompilerParams(
            dimension_semantics=("parallel", "parallel", "arbitrary")),
    )(xc, wr, b2)
    return out.reshape(n_ch * R, Cout)[:n_out]


def conv2d_pallas(x, w, b, *, padding=(0, 0), dilation=(1, 1), act=None):
    """x: (N,H,W,Cin) NHWC; w: (KH,KW,Cin,Cout); b: (Cout,).  stride = 1."""
    N, H, W, Cin = x.shape
    KH, KW, _, Cout = w.shape
    ph, pw = padding
    dh, dw = dilation

    if KH == 1 and KW == 1 and ph == 0 and pw == 0:
        out = _gemm_core(x.reshape(N * H * W, Cin), w.reshape(1, Cin, Cout),
                         b, act, (0,), N * H * W)
        return out.reshape(N, H, W, Cout)

    Hp, Wp = H + 2 * ph, W + 2 * pw
    Ho, Wo = Hp - dh * (KH - 1), Wp - dw * (KW - 1)
    # With the padded image flattened row-major at full width Wp, tap (i, j) is
    # a constant row offset; outputs are computed at all Hp*Wp positions and
    # the (small) garbage fringe is sliced away below.
    offs = tuple(i * dh * Wp + j * dw for i in range(KH) for j in range(KW))
    xp = jnp.pad(x, ((0, 0), (ph, ph), (pw, pw), (0, 0)))
    out = _gemm_core(xp.reshape(N * Hp * Wp, Cin),
                     w.reshape(KH * KW, Cin, Cout),
                     b, act, offs, N * Hp * Wp)
    return out.reshape(N, Hp, Wp, Cout)[:, :Ho, :Wo, :]


def conv1x1_lane_dense(x, w, b):
    """1x1 conv with tiny Cout (score heads, layer_dep0): computed transposed so
    the long N*H*W axis is the lane axis (lane-dense stores, full MXU N dim)."""
    N, H, W, Cin = x.shape
    Cout = w.shape[-1]
    M = N * H * W
    A = jnp.pad(jnp.transpose(w.reshape(Cin, Cout)),          # (Cout, Cin)
                ((0, _round_up(Cout, 8) - Cout), (0, 0)))
    Bt = jnp.transpose(x.reshape(M, Cin))                      # (Cin, M)
    outT = _gemm_core(A, Bt.reshape(1, Cin, M), jnp.zeros((M,), jnp.float32),
                      None, (0,), A.shape[0], tco_cap=1024)    # (Cout_pad, M)
    out = jnp.transpose(outT[:Cout]) + b[None, :]
    return out.reshape(N, H, W, Cout)


def apply_conv(x, p, act=None):
    return conv2d_pallas(x, p["w"], p["b"], padding=p["pad"], dilation=p["dil"],
                         act=act)


# ----------------------------------------------------------------------------
# JAX glue: bilinear (align_corners=True) resize, matching F.interpolate
# ----------------------------------------------------------------------------
def resize_bilinear_ac(x, out_h, out_w):
    N, H, W, C = x.shape
    if (H, W) == (out_h, out_w):
        return x

    def grid(out_s, in_s):
        if out_s <= 1 or in_s <= 1:
            src = jnp.zeros((max(out_s, 1),), jnp.float32)
        else:
            src = jnp.arange(out_s, dtype=jnp.float32) * ((in_s - 1) / (out_s - 1))
        i0 = jnp.clip(jnp.floor(src).astype(jnp.int32), 0, in_s - 1)
        i1 = jnp.clip(i0 + 1, 0, in_s - 1)
        wgt = src - i0.astype(jnp.float32)
        return i0, i1, wgt

    y0, y1, wy = grid(out_h, H)
    x0, x1, wx = grid(out_w, W)
    r0 = x[:, y0, :, :]
    r1 = x[:, y1, :, :]
    row = r0 * (1.0 - wy)[None, :, None, None] + r1 * wy[None, :, None, None]
    c0 = row[:, :, x0, :]
    c1 = row[:, :, x1, :]
    return c0 * (1.0 - wx)[None, None, :, None] + c1 * wx[None, None, :, None]


# ----------------------------------------------------------------------------
# Deterministic parameter construction
# ----------------------------------------------------------------------------
class PG:
    def __init__(self, seed=0):
        self._key = jax.random.PRNGKey(seed)

    def key(self):
        self._key, k = jax.random.split(self._key)
        return k


def P_conv(pg, cin, cout, k, pad=0, dil=1, bias=True, bn=False):
    kh, kw = (k, k) if isinstance(k, int) else k
    ph, pw = (pad, pad) if isinstance(pad, int) else pad
    dh, dw = (dil, dil) if isinstance(dil, int) else dil
    fan_in = cin * kh * kw
    w = jax.random.normal(pg.key(), (kh, kw, cin, cout), jnp.float32) / np.sqrt(fan_in)
    if bias:
        b = jax.random.normal(pg.key(), (cout,), jnp.float32) * 0.01
    else:
        b = jnp.zeros((cout,), jnp.float32)
    if bn:
        # eval-mode BatchNorm, default stats (gamma=1, beta=0, mean=0, var=1) folded in
        scale = 1.0 / np.sqrt(1.0 + 1e-5)
        w = w * scale
        b = b * scale
    return dict(w=w, b=b, pad=(ph, pw), dil=(dh, dw))


CIN = {1: 256, 2: 512, 3: 1024, 4: 2048}


def build_params(pg):
    P = {}
    P["dep0"] = P_conv(pg, 1, 3, 1)
    P["bb_r"] = {l: P_conv(pg, 3, CIN[l], 1) for l in (1, 2, 3, 4)}
    P["bb_t"] = {l: P_conv(pg, 3, CIN[l], 1) for l in (1, 2, 3, 4)}
    P["LI"], P["TC"], P["IC"], P["NV"], P["CB"], P["FAL"] = {}, {}, {}, {}, {}, {}
    for l in (1, 2, 3, 4):
        c = CIN[l]
        P["LI"][l] = dict(r=P_conv(pg, c, 256, 1), t=P_conv(pg, c, 256, 1),
                          m=P_conv(pg, 256, 256, 3, pad=1),
                          layer=P_conv(pg, 256, 256, 3, pad=1, bn=True))
        P["TC"][l] = dict(r=P_conv(pg, c, 256, 1), t=P_conv(pg, c, 256, 1),
                          m=P_conv(pg, 256, 256, 3, pad=1),
                          layer=P_conv(pg, 256, 256, 3, pad=1, bn=True))
        P["IC"][l] = dict(r1=P_conv(pg, c, 256, 1, bn=(l != 1)),
                          t1=P_conv(pg, c, 256, 1, bn=True),
                          r2a=P_conv(pg, 256, 256, 3, pad=1),
                          r2b=P_conv(pg, 256, 256, 3, pad=1),
                          t2a=P_conv(pg, 256, 256, 3, pad=1),
                          t2b=P_conv(pg, 256, 256, 3, pad=1))
        P["NV"][l] = dict(r=P_conv(pg, c, 256, 3, pad=2, dil=2),
                          t=P_conv(pg, c, 256, 3, pad=2, dil=2))
        P["CB"][l] = dict(r=P_conv(pg, c, 256, 3, pad=1),
                          t=P_conv(pg, c, 256, 3, pad=1))
        P["FAL"][l] = dict(fal=P_conv(pg, 2048, 128, 3, pad=1, bn=True),
                           fc1=P_conv(pg, 128, 64, 1, bias=False),
                           fc2=P_conv(pg, 64, 128, 1, bias=False))
    P["IIGM"] = {l: dict(c1=P_conv(pg, 128, 128, 3, pad=1),
                         c2=P_conv(pg, 128, 128, 3, pad=1),
                         c3=P_conv(pg, 128, 128, 1)) for l in (1, 2, 3, 4)}

    def gcm(in_ch, out_ch=32):
        def BC(ci, co, k, pad=0, dil=1):
            return P_conv(pg, ci, co, k, pad=pad, dil=dil, bias=False, bn=True)
        # Fuse the four 1x1 branch entry convs + conv_res into one 160-wide 1x1.
        ent = [BC(in_ch, out_ch, 1) for _ in range(5)]
        entry = dict(w=jnp.concatenate([e["w"] for e in ent], axis=-1),
                     b=jnp.concatenate([e["b"] for e in ent], axis=0),
                     pad=(0, 0), dil=(1, 1))
        return dict(
            entry=entry,
            b1=[BC(out_ch, out_ch, (1, 3), pad=(0, 1)),
                BC(out_ch, out_ch, (3, 1), pad=(1, 0)),
                BC(out_ch, out_ch, 3, pad=3, dil=3)],
            b2=[BC(out_ch, out_ch, (1, 5), pad=(0, 2)),
                BC(out_ch, out_ch, (5, 1), pad=(2, 0)),
                BC(out_ch, out_ch, 3, pad=5, dil=5)],
            b3=[BC(out_ch, out_ch, (1, 7), pad=(0, 3)),
                BC(out_ch, out_ch, (7, 1), pad=(3, 0)),
                BC(out_ch, out_ch, 3, pad=7, dil=7)],
            cat=BC(4 * out_ch, out_ch, 3, pad=1))

    P["GCM"] = {4: gcm(128), 3: gcm(160), 2: gcm(160), 1: gcm(160)}
    P["score"] = {l: P_conv(pg, 32, 1, 1) for l in (1, 2, 3, 4)}
    return P


# ----------------------------------------------------------------------------
# Sub-module forwards (NHWC)
# ----------------------------------------------------------------------------
def li_forward(p, rgb, t):
    t_mask = apply_conv(apply_conv(t, p["t"], act="relu"), p["m"], act="sigmoid")
    r = apply_conv(rgb, p["r"], act="relu")
    return apply_conv(r * t_mask + r, p["layer"], act="relu")


def tc_forward(p, rgb, t):
    rgb_mask = apply_conv(apply_conv(rgb, p["r"], act="relu"), p["m"], act="sigmoid")
    tt = apply_conv(t, p["t"], act="relu")
    return apply_conv(tt * rgb_mask + tt, p["layer"], act="relu")


def ic_forward(p, rgb, t):
    rgb1 = apply_conv(rgb, p["r1"])
    t1 = apply_conv(t, p["t1"])
    r2 = apply_conv(apply_conv(rgb1, p["r2a"]), p["r2b"])
    t2 = apply_conv(apply_conv(t1, p["t2a"]), p["t2b"])
    return jax.nn.relu(rgb1 + r2), jax.nn.relu(t1 + t2)


def ca_forward(p, x):
    # Channel attention on 1x1 pooled maps: tiny GEMMs; fused avg/max paths and
    # executed in plain JAX (a Pallas launch per 1xK GEMM is pure overhead).
    C = x.shape[-1]
    avg = jnp.mean(x, axis=(1, 2))            # (N, C)
    mx = jnp.max(x, axis=(1, 2))              # (N, C)
    v = jnp.concatenate([avg, mx], axis=0)    # (2N, C)
    w1 = p["fc1"]["w"].reshape(C, -1)
    w2 = p["fc2"]["w"].reshape(-1, C)
    h = jax.nn.relu(v @ w1) @ w2              # (2N, C)  (fc1/fc2 have no bias)
    a, m = jnp.split(h, 2, axis=0)
    gate = jax.nn.sigmoid(a + m)              # (N, C)
    return x * gate[:, None, None, :]


def fal_forward(p, feats):
    x = jnp.concatenate(feats, axis=-1)
    x = apply_conv(x, p["fal"], act="relu")
    return ca_forward(p, x)


def iigm_forward(p, f1, f2, f3):
    h3, w3 = f3.shape[1], f3.shape[2]
    if (f1.shape[1], f1.shape[2]) != (h3, w3):
        f1 = apply_conv(resize_bilinear_ac(f1, h3, w3), p["c1"], act="relu")
    if (f2.shape[1], f2.shape[2]) != (h3, w3):
        f2 = apply_conv(resize_bilinear_ac(f2, h3, w3), p["c2"], act="relu")
    f3 = apply_conv(f3, p["c3"], act="relu")
    mask12 = jax.nn.sigmoid(f1 + f2)
    return jax.nn.relu(f3 * mask12 + f3)


def gcm_forward(p, x):
    ent = apply_conv(x, p["entry"])   # fused b0 / b1..b3 entries / conv_res
    x0 = ent[..., 0:32]
    x1 = ent[..., 32:64]
    x2 = ent[..., 64:96]
    x3 = ent[..., 96:128]
    res = ent[..., 128:160]
    for q in p["b1"]:
        x1 = apply_conv(x1, q)        # BasicConv2d: conv + BN, no ReLU
    for q in p["b2"]:
        x2 = apply_conv(x2, q)
    for q in p["b3"]:
        x3 = apply_conv(x3, q)
    xc = apply_conv(jnp.concatenate([x0, x1, x2, x3], axis=-1), p["cat"])
    return jax.nn.relu(xc + res)


def backbone_forward(p, x):
    # TODO(synk): deterministic stub for Res2Net_model (source not provided).
    feats = {}
    N, H, W, C = x.shape
    for l, s in zip((1, 2, 3, 4), (4, 8, 16, 32)):
        pooled = x.reshape(N, H // s, s, W // s, s, C).mean(axis=(2, 4))
        feats[l] = apply_conv(pooled, p[l], act="relu")
    return feats


# ----------------------------------------------------------------------------
# Net forward
# ----------------------------------------------------------------------------
def net_forward(params, rgb_nchw, t_nchw):
    rgb = jnp.transpose(rgb_nchw, (0, 2, 3, 1))   # -> NHWC
    t = jnp.transpose(t_nchw, (0, 2, 3, 1))
    H, W = rgb.shape[1], rgb.shape[2]

    fr = backbone_forward(params["bb_r"], rgb)
    # layer_dep0: 1 -> 3 channels (tiny-Cout 1x1, lane-dense transposed GEMM)
    t3 = conv1x1_lane_dense(t, params["dep0"]["w"], params["dep0"]["b"])
    ft = backbone_forward(params["bb_t"], t3)

    fals = {}
    for L in (1, 2, 3, 4):
        r, tt = fr[L], ft[L]
        li = li_forward(params["LI"][L], r, tt)
        tc = tc_forward(params["TC"][L], r, tt)
        icr, ict = ic_forward(params["IC"][L], r, tt)
        nvr = apply_conv(r, params["NV"][L]["r"])
        nvt = apply_conv(tt, params["NV"][L]["t"])
        cbr = apply_conv(r, params["CB"][L]["r"])
        cbt = apply_conv(tt, params["CB"][L]["t"])
        fals[L] = fal_forward(params["FAL"][L],
                              [li, tc, icr, ict, nvr, nvt, cbr, cbt])

    ii4 = iigm_forward(params["IIGM"][4], fals[2], fals[3], fals[4])
    ii3 = iigm_forward(params["IIGM"][3], fals[1], fals[2], fals[3])
    ii2 = iigm_forward(params["IIGM"][2], fals[4], fals[3], fals[2])
    ii1 = iigm_forward(params["IIGM"][1], fals[3], fals[2], fals[1])

    x42 = gcm_forward(params["GCM"][4], ii4)
    x3c = jnp.concatenate([ii3, resize_bilinear_ac(x42, ii3.shape[1], ii3.shape[2])], axis=-1)
    x32 = gcm_forward(params["GCM"][3], x3c)
    x2c = jnp.concatenate([ii2, resize_bilinear_ac(x32, ii2.shape[1], ii2.shape[2])], axis=-1)
    x22 = gcm_forward(params["GCM"][2], x2c)
    x1c = jnp.concatenate([ii1, resize_bilinear_ac(x22, ii1.shape[1], ii1.shape[2])], axis=-1)
    x12 = gcm_forward(params["GCM"][1], x1c)

    def score(p, x):
        return conv1x1_lane_dense(x, p["w"], p["b"])

    out1 = resize_bilinear_ac(score(params["score"][1], x12), H, W)
    out2 = resize_bilinear_ac(score(params["score"][2], x22), H, W)
    out3 = resize_bilinear_ac(score(params["score"][3], x32), H, W)
    out4 = resize_bilinear_ac(score(params["score"][4], x42), H, W)

    to_nchw = lambda o: jnp.transpose(o, (0, 3, 1, 2))
    return to_nchw(out1), to_nchw(out2), to_nchw(out3), to_nchw(out4)


# ----------------------------------------------------------------------------
if __name__ == "__main__":
    key = jax.random.PRNGKey(0)
    k1, k2 = jax.random.split(key)
    N, H, W = 2, 64, 64
    rgb = jax.random.normal(k1, (N, 3, H, W), jnp.float32)
    t = jax.random.normal(k2, (N, 1, H, W), jnp.float32)

    params = build_params(PG(0))
    outs = net_forward(params, rgb, t)
    outs = jax.block_until_ready(outs)

    for o in outs:
        assert o.shape == (N, 1, H, W), o.shape
        assert bool(jnp.all(jnp.isfinite(o)))
    print("KERNEL_OK")
</pallas_src>

<mosaic_0001>
module attributes {stable_mosaic.version = 11 : i64} {
  func.func @_gemm_kernel(%arg0: i32, %arg1: i32, %arg2: i32, %arg3: memref<1x512x8xbf16, #tpu.memory_space<vmem>>, %arg4: memref<1x8x256xbf16, #tpu.memory_space<vmem>>, %arg5: memref<1x256xf32, #tpu.memory_space<vmem>>, %arg6: memref<1x512x256xf32, #tpu.memory_space<vmem>>, %arg7: memref<512x256xf32, #tpu.memory_space<vmem>>) attributes {dimension_semantics = [#tpu.dimension_semantics<parallel>, #tpu.dimension_semantics<parallel>, #tpu.dimension_semantics<arbitrary>], iteration_bounds = array<i64: 1, 1, 1>, scalar_prefetch = 0 : i64, scratch_operands = 1 : i64, tpu.core_type = #tpu.core_type<tc>, window_params = [{transform_indices = @transform_0, window_bounds = array<i64: 1, 512, 8>}, {transform_indices = @transform_1, window_bounds = array<i64: 1, 8, 256>}, {transform_indices = @transform_2, window_bounds = array<i64: 1, 256>}, {transform_indices = @transform_3, window_bounds = array<i64: 1, 512, 256>}]} {
    %c0_i32 = arith.constant 0 : i32
    %0 = arith.cmpi eq, %arg2, %c0_i32 : i32
    %1 = arith.extui %0 : i1 to i32
    %c0_i32_0 = arith.constant 0 : i32
    %2 = arith.cmpi ne, %1, %c0_i32_0 : i32
    scf.if %2 {
      %cst_12 = arith.constant 0.000000e+00 : f32
      %14 = vector.broadcast %cst_12 : f32 to vector<512x256xf32>
      %c0_13 = arith.constant 0 : index
      %c0_14 = arith.constant 0 : index
      %15 = vector.load %arg7[%c0_13, %c0_14] : memref<512x256xf32, #tpu.memory_space<vmem>>, vector<512x256xf32>
      tpu.vector_store %arg7[%c0_13, %c0_14], %14 {strides = array<i32>} : memref<512x256xf32, #tpu.memory_space<vmem>>, vector<512x256xf32>,
    } else {
    }
    %c0 = arith.constant 0 : index
    %c0_1 = arith.constant 0 : index
    %3 = vector.load %arg7[%c0, %c0_1] : memref<512x256xf32, #tpu.memory_space<vmem>>, vector<512x256xf32>
    %c0_2 = arith.constant 0 : index
    %c0_3 = arith.constant 0 : index
    %c0_4 = arith.constant 0 : index
    %4 = vector.load %arg3[%c0_2, %c0_3, %c0_4] : memref<1x512x8xbf16, #tpu.memory_space<vmem>>, vector<1x512x8xbf16>
    %5 = vector.shape_cast %4 : vector<1x512x8xbf16> to vector<512x8xbf16>
    %c0_5 = arith.constant 0 : index
    %c0_6 = arith.constant 0 : index
    %c0_7 = arith.constant 0 : index
    %6 = vector.load %arg4[%c0_5, %c0_6, %c0_7] : memref<1x8x256xbf16, #tpu.memory_space<vmem>>, vector<1x8x256xbf16>
    %7 = vector.shape_cast %6 : vector<1x8x256xbf16> to vector<8x256xbf16>
    %cst = arith.constant dense<0.000000e+00> : vector<512x256xf32>
    %8 = tpu.matmul %5, %7, %cst {dimension_numbers = #tpu.dot_dimension_numbers<[1], [0], [0], [1], [0, 0, 1, 1], [], []>} : vector<512x8xbf16>, vector<8x256xbf16>, vector<512x256xf32> -> vector<512x256xf32>
    %9 = arith.addf %3, %8 : vector<512x256xf32>
    %c0_8 = arith.constant 0 : index
    %c0_9 = arith.constant 0 : index
    %10 = vector.load %arg7[%c0_8, %c0_9] : memref<512x256xf32, #tpu.memory_space<vmem>>, vector<512x256xf32>
    tpu.vector_store %arg7[%c0_8, %c0_9], %9 {strides = array<i32>} : memref<512x256xf32, #tpu.memory_space<vmem>>, vector<512x256xf32>,
    %c0_i32_10 = arith.constant 0 : i32
    %11 = arith.cmpi eq, %arg2, %c0_i32_10 : i32
    %12 = arith.extui %11 : i1 to i32
    %c0_i32_11 = arith.constant 0 : i32
    %13 = arith.cmpi ne, %12, %c0_i32_11 : i32
    scf.if %13 {
      %c0_12 = arith.constant 0 : index
      %c0_13 = arith.constant 0 : index
      %14 = vector.load %arg7[%c0_12, %c0_13] : memref<512x256xf32, #tpu.memory_space<vmem>>, vector<512x256xf32>
      %c0_14 = arith.constant 0 : index
      %c0_15 = arith.constant 0 : index
      %15 = vector.load %arg5[%c0_14, %c0_15] : memref<1x256xf32, #tpu.memory_space<vmem>>, vector<1x256xf32>
      %16 = vector.broadcast %15 : vector<1x256xf32> to vector<512x256xf32>
      %17 = arith.addf %14, %16 : vector<512x256xf32>
      %cst_16 = arith.constant 0.000000e+00 : f32
      %18 = vector.broadcast %cst_16 : f32 to vector<512x256xf32>
      %19 = arith.maximumf %17, %18 : vector<512x256xf32>
      %c0_17 = arith.constant 0 : index
      %c0_18 = arith.constant 0 : index
      %c0_19 = arith.constant 0 : index
      %20 = vector.load %arg6[%c0_17, %c0_18, %c0_19] : memref<1x512x256xf32, #tpu.memory_space<vmem>>, vector<1x512x256xf32>
      %21 = vector.shape_cast %20 : vector<1x512x256xf32> to vector<512x256xf32>
      %22 = vector.shape_cast %19 : vector<512x256xf32> to vector<1x512x256xf32>
      tpu.vector_store %arg6[%c0_17, %c0_18, %c0_19], %22 {strides = array<i32>} : memref<1x512x256xf32, #tpu.memory_space<vmem>>, vector<1x512x256xf32>,
    } else {
    }
    return
  }
  func.func @transform_0(%arg0: i32, %arg1: i32, %arg2: i32) -> (i32, i32, i32) {
    %c0_i32 = arith.constant 0 : i32
    %c0_i32_0 = arith.constant 0 : i32
    return %arg0, %c0_i32, %arg2 : i32, i32, i32
  }
  func.func @transform_1(%arg0: i32, %arg1: i32, %arg2: i32) -> (i32, i32, i32) {
    %c0_i32 = arith.constant 0 : i32
    %c0_i32_0 = arith.constant 0 : i32
    return %arg2, %c0_i32, %arg1 : i32, i32, i32
  }
  func.func @transform_2(%arg0: i32, %arg1: i32, %arg2: i32) -> (i32, i32) {
    %c0_i32 = arith.constant 0 : i32
    %c0_i32_0 = arith.constant 0 : i32
    return %c0_i32, %arg1 : i32, i32
  }
  func.func @transform_3(%arg0: i32, %arg1: i32, %arg2: i32) -> (i32, i32, i32) {
    %c0_i32 = arith.constant 0 : i32
    %c0_i32_0 = arith.constant 0 : i32
    return %arg0, %c0_i32, %arg1 : i32, i32, i32
  }
}

</mosaic_0001>

<bundles_post_ra>
// kernel: tpu_custom_call.1
= control target key start
LH: loop header
LB: loop body
LE: loop exit
PB: predicated region body
PF: predicated region fallthrough
CT: control target
= control target key end

     0   :  { %vm603_vm0 = vcmask 1043456   ;;  %v1893_v3 = vmov 0   ;;  %vm506_vm1 = vcmask 64512   ;;  %s2227_s0 = inlined_call_operand.vmem [shape: bf16[1,512,8], index: 0, kind: input, shape index: {}]   ;;  %s2228_s1 = inlined_call_operand.vmem [shape: bf16[1,8,256], index: 1, kind: input, shape index: {}]   ;;  %s2229_s2 = inlined_call_operand.vmem [shape: f32[1,256], index: 2, kind: input, shape index: {}]   ;;  %s2230_s3 = inlined_call_operand.hbm [shape: f32[1,512,256], index: 3, kind: output, shape index: {}]  }
   0x1   :  { %v340_v0 = vld [vmem:[%s2228_s1] sm:$0xff]  ;;  %642 = vmatprep.mubr.bf16.mxu0 %v1893_v3  ;;  %802 = vmatprep.mubr.bf16.mxu1 %v1893_v3  ;;  %v1839_v7 = vld [vmem:[%s2227_s0 + $0x8] sm:$0xff]   ;;  %v1841_v9 = vld [vmem:[%s2227_s0 + $0x10] sm:$0xff]  }
   0x2   :  { %v1795_v1 = vcombine.high %v340_v0, %v340_v0  ;;  %v1794_v2 = vcombine.low %v340_v0, %v340_v0  ;;  %v1837_v4 = vld [vmem:[%s2227_s0] sm:$0xff]   ;;  %v1840_v8 = vld [vmem:[%s2227_s0 + $0x88] sm:$0xff]   ;;  %v1842_v10 = vld [vmem:[%s2227_s0 + $0x90] sm:$0xff]  }
   0x3   :  { %v1838_v6 = vld [vmem:[%s2227_s0 + $0x80] sm:$0xff]   ;;  %v1843_v11 = vld [vmem:[%s2227_s0 + $0x18] sm:$0xff]  }
   0x4   :  { %1796 = vmatprep.subr.msk.bf16.mxu0 %vm603_vm0, %v1795_v1  ;;  %1829 = vmatprep.subr.msk.bf16.mxu1 %vm603_vm0, %v1795_v1  ;;  %v605_v5 = vsel %vm603_vm0, %v1794_v2, 0  ;;  %v1844_v12 = vld [vmem:[%s2227_s0 + $0x98] sm:$0xff]  }
   0x5   :  { %611 = vmatpush1.bf16.msra.mxu0 %v605_v5  ;;  %1830 = vmatpush1.bf16.msra.mxu1 %v605_v5 }
   0x8   :  { %1797 = vmatmul.mubr.msk.bf16.vlgmr.msra.gmra.mrb[0].mxu0 %vm506_vm1, %v1837_v4  ;;  %1813 = vmatmul.mubr.msk.bf16.vlgmr.msra.gmra.mrb[0].mxu1 %vm506_vm1, %v1838_v6 }
   0x9   :  { %652 = vmatprep.mubr.bf16.mxu0 %v1893_v3  ;;  %812 = vmatprep.mubr.bf16.mxu1 %v1893_v3 }
  0x10   :  { %1798 = vmatmul.mubr.msk.bf16.gmra.mrb[4].mxu0 %vm506_vm1, %v1839_v7  ;;  %1814 = vmatmul.mubr.msk.bf16.gmra.mrb[4].mxu1 %vm506_vm1, %v1840_v8 }
  0x11   :  { %662 = vmatprep.mubr.bf16.mxu0 %v1893_v3  ;;  %822 = vmatprep.mubr.bf16.mxu1 %v1893_v3 }
  0x18   :  { %1799 = vmatmul.mubr.msk.bf16.gmra.mrb[8].mxu0 %vm506_vm1, %v1841_v9  ;;  %1815 = vmatmul.mubr.msk.bf16.gmra.mrb[8].mxu1 %vm506_vm1, %v1842_v10 }
  0x19   :  { %672 = vmatprep.mubr.bf16.mxu0 %v1893_v3  ;;  %832 = vmatprep.mubr.bf16.mxu1 %v1893_v3 }
  0x20   :  { %1800 = vmatmul.mubr.msk.bf16.gmra.mrb[12].mxu0 %vm506_vm1, %v1843_v11  ;;  %1816 = vmatmul.mubr.msk.bf16.gmra.mrb[12].mxu1 %vm506_vm1, %v1844_v12 }
  0x21   :  { %682 = vmatprep.mubr.bf16.mxu0 %v1893_v3  ;;  %842 = vmatprep.mubr.bf16.mxu1 %v1893_v3 }
  0x22   :  { %8 = vsyncpa [#allocation4], 0  ;;  %v1845_v13 = vld [vmem:[%s2227_s0 + $0x20] sm:$0xff]   ;;  %v1847_v15 = vld [vmem:[%s2227_s0 + $0x28] sm:$0xff]   ;;  %v1352_v37 = vlaneseq }
  0x23   :  { %v1846_v14 = vld [vmem:[%s2227_s0 + $0xa0] sm:$0xff]   ;;  %v1848_v16 = vld [vmem:[%s2227_s0 + $0xa8] sm:$0xff]   ;;  %v1849_v17 = vld [vmem:[%s2227_s0 + $0x30] sm:$0xff]  }
  0x24   :  { %v1850_v18 = vld [vmem:[%s2227_s0 + $0xb0] sm:$0xff]   ;;  %v1851_v19 = vld [vmem:[%s2227_s0 + $0x38] sm:$0xff]   ;;  %v1853_v21 = vld [vmem:[%s2227_s0 + $0x40] sm:$0xff]   ;;  %v1353_v38 = vshrl.u32 %v1352_v37, 7 }
  0x25   :  { %v1852_v20 = vld [vmem:[%s2227_s0 + $0xb8] sm:$0xff]   ;;  %v1854_v22 = vld [vmem:[%s2227_s0 + $0xc0] sm:$0xff]   ;;  %v1855_v23 = vld [vmem:[%s2227_s0 + $0x48] sm:$0xff]  }
  0x26   :  { %v1856_v24 = vld [vmem:[%s2227_s0 + $0xc8] sm:$0xff]   ;;  %v1857_v25 = vld [vmem:[%s2227_s0 + $0x50] sm:$0xff]   ;;  %v1859_v27 = vld [vmem:[%s2227_s0 + $0x58] sm:$0xff]   ;;  %v1354_v39 = vsub.s32 0, %v1353_v38  ;;  %v1358_v41 = vsub.s32 1, %v1353_v38 }
  0x27   :  { %v1858_v26 = vld [vmem:[%s2227_s0 + $0xd0] sm:$0xff]   ;;  %v1860_v28 = vld [vmem:[%s2227_s0 + $0xd8] sm:$0xff]   ;;  %v1861_v29 = vld [vmem:[%s2227_s0 + $0x60] sm:$0xff]  }
  0x28   :  { %1801 = vmatmul.mubr.msk.bf16.gmra.mrb[16].mxu0 %vm506_vm1, %v1845_v13  ;;  %1817 = vmatmul.mubr.msk.bf16.gmra.mrb[16].mxu1 %vm506_vm1, %v1846_v14  ;;  %v1862_v30 = vld [vmem:[%s2227_s0 + $0xe0] sm:$0xff]   ;;  %v1863_v31 = vld [vmem:[%s2227_s0 + $0x68] sm:$0xff]   ;;  %v1865_v33 = vld [vmem:[%s2227_s0 + $0x70] sm:$0xff]  }
  0x29   :  { %692 = vmatprep.mubr.bf16.mxu0 %v1893_v3  ;;  %852 = vmatprep.mubr.bf16.mxu1 %v1893_v3  ;;  %v1864_v32 = vld [vmem:[%s2227_s0 + $0xe8] sm:$0xff]   ;;  %v1866_v34 = vld [vmem:[%s2227_s0 + $0xf0] sm:$0xff]   ;;  %v1867_v35 = vld [vmem:[%s2227_s0 + $0x78] sm:$0xff]  }
  0x2a   :  { %v1868_v36 = vld [vmem:[%s2227_s0 + $0xf8] sm:$0xff]   ;;  %v1350_v40 = vld [vmem:[%s2229_s2] sm:$0x3]  ;;  %s1894_s0 = smov [#allocation3]  }
  0x2b   :  { %v2083_v42 = vrot.slane %v1350_v40, %v1354_v39  ;;  %v2085_v43 = vrot.slane %v1350_v40, %v1358_v41  ;;  %s1751_s2 = sshll.u32 %s1894_s0, 4  ;;  %s1752_s2 = int_to_ptr.vmem [resolvable:$true] %s1751_s2 }
  0x2c   :  { %s1869_s23 = scalar_lea.vmem %s1752_s2, 16384  ;;  %p1874_p1 = scmp.lt.s32.totalorder %s1752_s2, %s1752_s2 }
  0x2d   :  { %p1870_p0 = scmp.ne.s32.totalorder %s1752_s2, %s1869_s23  ;;  %p1875_p2 = scmp.lt.s32.totalorder %s1869_s23, %s1869_s23 }
  0x2f   :  { %p1876_p3 = por %p1875_p2, %p1874_p1 }
  0x30   :  { %1802 = vmatmul.mubr.msk.bf16.gmra.mrb[20].mxu0 %vm506_vm1, %v1847_v15  ;;  %1818 = vmatmul.mubr.msk.bf16.gmra.mrb[20].mxu1 %vm506_vm1, %v1848_v16 }
  0x31   :  { %702 = vmatprep.mubr.bf16.mxu0 %v1893_v3  ;;  %862 = vmatprep.mubr.bf16.mxu1 %v1893_v3  ;;  %p1877_p4 = pnand %p1876_p3, %p1870_p0 }
  0x38   :  { %1803 = vmatmul.mubr.msk.bf16.gmra.mrb[24].mxu0 %vm506_vm1, %v1849_v17  ;;  %1819 = vmatmul.mubr.msk.bf16.gmra.mrb[24].mxu1 %vm506_vm1, %v1850_v18 }
  0x39   :  { %712 = vmatprep.mubr.bf16.mxu0 %v1893_v3  ;;  %872 = vmatprep.mubr.bf16.mxu1 %v1893_v3 }
  0x40   :  { %1804 = vmatmul.mubr.msk.bf16.gmra.mrb[28].mxu0 %vm506_vm1, %v1851_v19  ;;  %1820 = vmatmul.mubr.msk.bf16.gmra.mrb[28].mxu1 %vm506_vm1, %v1852_v20 }
  0x41   :  { %722 = vmatprep.mubr.bf16.mxu0 %v1893_v3  ;;  %882 = vmatprep.mubr.bf16.mxu1 %v1893_v3 }
  0x48   :  { %1805 = vmatmul.mubr.msk.bf16.gmra.mrb[32].mxu0 %vm506_vm1, %v1853_v21  ;;  %1821 = vmatmul.mubr.msk.bf16.gmra.mrb[32].mxu1 %vm506_vm1, %v1854_v22 }
  0x49   :  { %732 = vmatprep.mubr.bf16.mxu0 %v1893_v3  ;;  %892 = vmatprep.mubr.bf16.mxu1 %v1893_v3 }
  0x50   :  { %1806 = vmatmul.mubr.msk.bf16.gmra.mrb[36].mxu0 %vm506_vm1, %v1855_v23  ;;  %1822 = vmatmul.mubr.msk.bf16.gmra.mrb[36].mxu1 %vm506_vm1, %v1856_v24 }
  0x51   :  { %742 = vmatprep.mubr.bf16.mxu0 %v1893_v3  ;;  %902 = vmatprep.mubr.bf16.mxu1 %v1893_v3 }
  0x58   :  { %1807 = vmatmul.mubr.msk.bf16.gmra.mrb[40].mxu0 %vm506_vm1, %v1857_v25  ;;  %1823 = vmatmul.mubr.msk.bf16.gmra.mrb[40].mxu1 %vm506_vm1, %v1858_v26 }
  0x59   :  { %752 = vmatprep.mubr.bf16.mxu0 %v1893_v3  ;;  %912 = vmatprep.mubr.bf16.mxu1 %v1893_v3 }
  0x60   :  { %1808 = vmatmul.mubr.msk.bf16.gmra.mrb[44].mxu0 %vm506_vm1, %v1859_v27  ;;  %1824 = vmatmul.mubr.msk.bf16.gmra.mrb[44].mxu1 %vm506_vm1, %v1860_v28 }
  0x61   :  { %762 = vmatprep.mubr.bf16.mxu0 %v1893_v3  ;;  %922 = vmatprep.mubr.bf16.mxu1 %v1893_v3 }
  0x68   :  { %1809 = vmatmul.mubr.msk.bf16.gmra.mrb[48].mxu0 %vm506_vm1, %v1861_v29  ;;  %1825 = vmatmul.mubr.msk.bf16.gmra.mrb[48].mxu1 %vm506_vm1, %v1862_v30 }
  0x69   :  { %772 = vmatprep.mubr.bf16.mxu0 %v1893_v3  ;;  %932 = vmatprep.mubr.bf16.mxu1 %v1893_v3 }
  0x70   :  { %1810 = vmatmul.mubr.msk.bf16.gmra.mrb[52].mxu0 %vm506_vm1, %v1863_v31  ;;  %1826 = vmatmul.mubr.msk.bf16.gmra.mrb[52].mxu1 %vm506_vm1, %v1864_v32 }
  0x71   :  { %782 = vmatprep.mubr.bf16.mxu0 %v1893_v3  ;;  %942 = vmatprep.mubr.bf16.mxu1 %v1893_v3 }
  0x78   :  { %1811 = vmatmul.mubr.msk.bf16.gmra.mrb[56].mxu0 %vm506_vm1, %v1865_v33  ;;  %1827 = vmatmul.mubr.msk.bf16.gmra.mrb[56].mxu1 %vm506_vm1, %v1866_v34 }
  0x79   :  { %792 = vmatprep.mubr.bf16.mxu0 %v1893_v3  ;;  %952 = vmatprep.mubr.bf16.mxu1 %v1893_v3 }
  0x80   :  { %1812 = vmatmul.mubr.msk.bf16.gmra.mrb[60].mxu0 %vm506_vm1, %v1867_v35  ;;  %1828 = vmatmul.mubr.msk.bf16.gmra.mrb[60].mxu1 %vm506_vm1, %v1868_v36 }
  0xdb   :  { %v644_v44 = vpop.f32.mrb[0].mxu0  ;;  %v804_v45 = vpop.f32.mrb[0].mxu1 }
  0xdc   :  { %v1362_v46 = vadd.f32 %v2083_v42, %v644_v44  ;;  %v1426_v47 = vadd.f32 %v2083_v42, %v804_v45  ;;  %v646_v48 = vpop.f32.mrb[1].mxu0  ;;  %v806_v49 = vpop.f32.mrb[1].mxu1 }
  0xdd   :  { %v1363_v50 = vadd.f32 %v2085_v43, %v646_v48  ;;  %v1427_v51 = vadd.f32 %v2085_v43, %v806_v49  ;;  %v648_v52 = vpop.f32.mrb[2].mxu0  ;;  %v808_v53 = vpop.f32.mrb[2].mxu1 }
  0xde   :  { %v1490_v54 = vmax.f32 %v1362_v46, 0.0  ;;  %v1554_v55 = vmax.f32 %v1426_v47, 0.0  ;;  %v1364_v56 = vadd.f32 %v2083_v42, %v648_v52  ;;  %v1428_v57 = vadd.f32 %v2083_v42, %v808_v53  ;;  %v650_v58 = vpop.f32.mrb[3].mxu0  ;;  %v810_v59 = vpop.f32.mrb[3].mxu1 }
  0xdf   :  { %v1491_v60 = vmax.f32 %v1363_v50, 0.0  ;;  %v1555_v61 = vmax.f32 %v1427_v51, 0.0  ;;  %v1365_v62 = vadd.f32 %v2085_v43, %v650_v58  ;;  %v1429_v63 = vadd.f32 %v2085_v43, %v810_v59 }
  0xe0   :  { %1618 = vst [vmem:[#allocation3] sm:$0xff] %v1490_v54  ;;  %1682 = vst [vmem:[#allocation3 + $0x200] sm:$0xff] %v1554_v55  ;;  %v1492_v0 = vmax.f32 %v1364_v56, 0.0  ;;  %v1556_v1 = vmax.f32 %v1428_v57, 0.0 }
  0xe1   :  { %1619 = vst [vmem:[#allocation3 + $0x8] sm:$0xff] %v1491_v60  ;;  %1683 = vst [vmem:[#allocation3 + $0x208] sm:$0xff] %v1555_v61  ;;  %v1493_v2 = vmax.f32 %v1365_v62, 0.0  ;;  %v1557_v3 = vmax.f32 %v1429_v63, 0.0 }
  0xe2   :  { %1620 = vst [vmem:[#allocation3 + $0x10] sm:$0xff] %v1492_v0  ;;  %1684 = vst [vmem:[#allocation3 + $0x210] sm:$0xff] %v1556_v1 }
  0xe3   :  { %1621 = vst [vmem:[#allocation3 + $0x18] sm:$0xff] %v1493_v2  ;;  %1685 = vst [vmem:[#allocation3 + $0x218] sm:$0xff] %v1557_v3  ;;  %v654_v4 = vpop.f32.mrb[4].mxu0  ;;  %v814_v5 = vpop.f32.mrb[4].mxu1 }
  0xe4   :  { %v1366_v6 = vadd.f32 %v2083_v42, %v654_v4  ;;  %v1430_v7 = vadd.f32 %v2083_v42, %v814_v5  ;;  %v656_v8 = vpop.f32.mrb[5].mxu0  ;;  %v816_v9 = vpop.f32.mrb[5].mxu1 }
  0xe5   :  { %v1367_v10 = vadd.f32 %v2085_v43, %v656_v8  ;;  %v1431_v11 = vadd.f32 %v2085_v43, %v816_v9  ;;  %v658_v12 = vpop.f32.mrb[6].mxu0  ;;  %v818_v13 = vpop.f32.mrb[6].mxu1 }
  0xe6   :  { %v1494_v14 = vmax.f32 %v1366_v6, 0.0  ;;  %v1558_v15 = vmax.f32 %v1430_v7, 0.0  ;;  %v1368_v16 = vadd.f32 %v2083_v42, %v658_v12  ;;  %v1432_v17 = vadd.f32 %v2083_v42, %v818_v13  ;;  %v660_v18 = vpop.f32.mrb[7].mxu0  ;;  %v820_v19 = vpop.f32.mrb[7].mxu1 }
  0xe7   :  { %v1495_v20 = vmax.f32 %v1367_v10, 0.0  ;;  %v1559_v21 = vmax.f32 %v1431_v11, 0.0  ;;  %v1369_v22 = vadd.f32 %v2085_v43, %v660_v18  ;;  %v1433_v23 = vadd.f32 %v2085_v43, %v820_v19 }
  0xe8   :  { %1622 = vst [vmem:[#allocation3 + $0x20] sm:$0xff] %v1494_v14  ;;  %1686 = vst [vmem:[#allocation3 + $0x220] sm:$0xff] %v1558_v15  ;;  %v1496_v24 = vmax.f32 %v1368_v16, 0.0  ;;  %v1560_v25 = vmax.f32 %v1432_v17, 0.0 }
  0xe9   :  { %1623 = vst [vmem:[#allocation3 + $0x28] sm:$0xff] %v1495_v20  ;;  %1687 = vst [vmem:[#allocation3 + $0x228] sm:$0xff] %v1559_v21  ;;  %v1497_v26 = vmax.f32 %v1369_v22, 0.0  ;;  %v1561_v27 = vmax.f32 %v1433_v23, 0.0 }
  0xea   :  { %1624 = vst [vmem:[#allocation3 + $0x30] sm:$0xff] %v1496_v24  ;;  %1688 = vst [vmem:[#allocation3 + $0x230] sm:$0xff] %v1560_v25 }
  0xeb   :  { %1625 = vst [vmem:[#allocation3 + $0x38] sm:$0xff] %v1497_v26  ;;  %1689 = vst [vmem:[#allocation3 + $0x238] sm:$0xff] %v1561_v27  ;;  %v664_v28 = vpop.f32.mrb[8].mxu0  ;;  %v824_v29 = vpop.f32.mrb[8].mxu1 }
  0xec   :  { %v1370_v30 = vadd.f32 %v2083_v42, %v664_v28  ;;  %v1434_v31 = vadd.f32 %v2083_v42, %v824_v29  ;;  %v666_v32 = vpop.f32.mrb[9].mxu0  ;;  %v826_v33 = vpop.f32.mrb[9].mxu1 }
  0xed   :  { %v1371_v34 = vadd.f32 %v2085_v43, %v666_v32  ;;  %v1435_v35 = vadd.f32 %v2085_v43, %v826_v33  ;;  %v668_v36 = vpop.f32.mrb[10].mxu0  ;;  %v828_v37 = vpop.f32.mrb[10].mxu1 }
  0xee   :  { %v1498_v38 = vmax.f32 %v1370_v30, 0.0  ;;  %v1562_v39 = vmax.f32 %v1434_v31, 0.0  ;;  %v1372_v40 = vadd.f32 %v2083_v42, %v668_v36  ;;  %v1436_v41 = vadd.f32 %v2083_v42, %v828_v37  ;;  %v670_v44 = vpop.f32.mrb[11].mxu0  ;;  %v830_v45 = vpop.f32.mrb[11].mxu1 }
  0xef   :  { %v1499_v46 = vmax.f32 %v1371_v34, 0.0  ;;  %v1563_v47 = vmax.f32 %v1435_v35, 0.0  ;;  %v1373_v48 = vadd.f32 %v2085_v43, %v670_v44  ;;  %v1437_v49 = vadd.f32 %v2085_v43, %v830_v45 }
  0xf0   :  { %1626 = vst [vmem:[#allocation3 + $0x40] sm:$0xff] %v1498_v38  ;;  %1690 = vst [vmem:[#allocation3 + $0x240] sm:$0xff] %v1562_v39  ;;  %v1500_v50 = vmax.f32 %v1372_v40, 0.0  ;;  %v1564_v51 = vmax.f32 %v1436_v41, 0.0 }
  0xf1   :  { %1627 = vst [vmem:[#allocation3 + $0x48] sm:$0xff] %v1499_v46  ;;  %1691 = vst [vmem:[#allocation3 + $0x248] sm:$0xff] %v1563_v47  ;;  %v1501_v52 = vmax.f32 %v1373_v48, 0.0  ;;  %v1565_v53 = vmax.f32 %v1437_v49, 0.0 }
  0xf2   :  { %1628 = vst [vmem:[#allocation3 + $0x50] sm:$0xff] %v1500_v50  ;;  %1692 = vst [vmem:[#allocation3 + $0x250] sm:$0xff] %v1564_v51 }
  0xf3   :  { %1629 = vst [vmem:[#allocation3 + $0x58] sm:$0xff] %v1501_v52  ;;  %1693 = vst [vmem:[#allocation3 + $0x258] sm:$0xff] %v1565_v53  ;;  %v674_v54 = vpop.f32.mrb[12].mxu0  ;;  %v834_v55 = vpop.f32.mrb[12].mxu1 }
  0xf4   :  { %v1374_v56 = vadd.f32 %v2083_v42, %v674_v54  ;;  %v1438_v57 = vadd.f32 %v2083_v42, %v834_v55  ;;  %v676_v58 = vpop.f32.mrb[13].mxu0  ;;  %v836_v59 = vpop.f32.mrb[13].mxu1 }
  0xf5   :  { %v1375_v60 = vadd.f32 %v2085_v43, %v676_v58  ;;  %v1439_v61 = vadd.f32 %v2085_v43, %v836_v59  ;;  %v678_v62 = vpop.f32.mrb[14].mxu0  ;;  %v838_v63 = vpop.f32.mrb[14].mxu1 }
  0xf6   :  { %v1502_v0 = vmax.f32 %v1374_v56, 0.0  ;;  %v1566_v1 = vmax.f32 %v1438_v57, 0.0  ;;  %v1376_v2 = vadd.f32 %v2083_v42, %v678_v62  ;;  %v1440_v3 = vadd.f32 %v2083_v42, %v838_v63  ;;  %v680_v4 = vpop.f32.mrb[15].mxu0  ;;  %v840_v5 = vpop.f32.mrb[15].mxu1 }
  0xf7   :  { %v1503_v6 = vmax.f32 %v1375_v60, 0.0  ;;  %v1567_v7 = vmax.f32 %v1439_v61, 0.0  ;;  %v1377_v8 = vadd.f32 %v2085_v43, %v680_v4  ;;  %v1441_v9 = vadd.f32 %v2085_v43, %v840_v5 }
  0xf8   :  { %1630 = vst [vmem:[#allocation3 + $0x60] sm:$0xff] %v1502_v0  ;;  %1694 = vst [vmem:[#allocation3 + $0x260] sm:$0xff] %v1566_v1  ;;  %v1504_v10 = vmax.f32 %v1376_v2, 0.0  ;;  %v1568_v11 = vmax.f32 %v1440_v3, 0.0 }
  0xf9   :  { %1631 = vst [vmem:[#allocation3 + $0x68] sm:$0xff] %v1503_v6  ;;  %1695 = vst [vmem:[#allocation3 + $0x268] sm:$0xff] %v1567_v7  ;;  %v1505_v12 = vmax.f32 %v1377_v8, 0.0  ;;  %v1569_v13 = vmax.f32 %v1441_v9, 0.0 }
  0xfa   :  { %1632 = vst [vmem:[#allocation3 + $0x70] sm:$0xff] %v1504_v10  ;;  %1696 = vst [vmem:[#allocation3 + $0x270] sm:$0xff] %v1568_v11 }
  0xfb   :  { %1633 = vst [vmem:[#allocation3 + $0x78] sm:$0xff] %v1505_v12  ;;  %1697 = vst [vmem:[#allocation3 + $0x278] sm:$0xff] %v1569_v13  ;;  %v684_v14 = vpop.f32.mrb[16].mxu0  ;;  %v844_v15 = vpop.f32.mrb[16].mxu1 }
  0xfc   :  { %v1378_v16 = vadd.f32 %v2083_v42, %v684_v14  ;;  %v1442_v17 = vadd.f32 %v2083_v42, %v844_v15  ;;  %v686_v18 = vpop.f32.mrb[17].mxu0  ;;  %v846_v19 = vpop.f32.mrb[17].mxu1 }
  0xfd   :  { %v1379_v20 = vadd.f32 %v2085_v43, %v686_v18  ;;  %v1443_v21 = vadd.f32 %v2085_v43, %v846_v19  ;;  %v688_v22 = vpop.f32.mrb[18].mxu0  ;;  %v848_v23 = vpop.f32.mrb[18].mxu1 }
  0xfe   :  { %v1506_v24 = vmax.f32 %v1378_v16, 0.0  ;;  %v1570_v25 = vmax.f32 %v1442_v17, 0.0  ;;  %v1380_v26 = vadd.f32 %v2083_v42, %v688_v22  ;;  %v1444_v27 = vadd.f32 %v2083_v42, %v848_v23  ;;  %v690_v28 = vpop.f32.mrb[19].mxu0  ;;  %v850_v29 = vpop.f32.mrb[19].mxu1 }
  0xff   :  { %v1507_v30 = vmax.f32 %v1379_v20, 0.0  ;;  %v1571_v31 = vmax.f32 %v1443_v21, 0.0  ;;  %v1381_v32 = vadd.f32 %v2085_v43, %v690_v28  ;;  %v1445_v33 = vadd.f32 %v2085_v43, %v850_v29 }
 0x100   :  { %1634 = vst [vmem:[#allocation3 + $0x80] sm:$0xff] %v1506_v24  ;;  %1698 = vst [vmem:[#allocation3 + $0x280] sm:$0xff] %v1570_v25  ;;  %v1508_v34 = vmax.f32 %v1380_v26, 0.0  ;;  %v1572_v35 = vmax.f32 %v1444_v27, 0.0 }
 0x101   :  { %1635 = vst [vmem:[#allocation3 + $0x88] sm:$0xff] %v1507_v30  ;;  %1699 = vst [vmem:[#allocation3 + $0x288] sm:$0xff] %v1571_v31  ;;  %v1509_v36 = vmax.f32 %v1381_v32, 0.0  ;;  %v1573_v37 = vmax.f32 %v1445_v33, 0.0 }
 0x102   :  { %1636 = vst [vmem:[#allocation3 + $0x90] sm:$0xff] %v1508_v34  ;;  %1700 = vst [vmem:[#allocation3 + $0x290] sm:$0xff] %v1572_v35 }
 0x103   :  { %1637 = vst [vmem:[#allocation3 + $0x98] sm:$0xff] %v1509_v36  ;;  %1701 = vst [vmem:[#allocation3 + $0x298] sm:$0xff] %v1573_v37  ;;  %v694_v38 = vpop.f32.mrb[20].mxu0  ;;  %v854_v39 = vpop.f32.mrb[20].mxu1 }
 0x104   :  { %v1382_v40 = vadd.f32 %v2083_v42, %v694_v38  ;;  %v1446_v41 = vadd.f32 %v2083_v42, %v854_v39  ;;  %v696_v44 = vpop.f32.mrb[21].mxu0  ;;  %v856_v45 = vpop.f32.mrb[21].mxu1 }
 0x105   :  { %v1383_v46 = vadd.f32 %v2085_v43, %v696_v44  ;;  %v1447_v47 = vadd.f32 %v2085_v43, %v856_v45  ;;  %v698_v48 = vpop.f32.mrb[22].mxu0  ;;  %v858_v49 = vpop.f32.mrb[22].mxu1 }
 0x106   :  { %v1510_v50 = vmax.f32 %v1382_v40, 0.0  ;;  %v1574_v51 = vmax.f32 %v1446_v41, 0.0  ;;  %v1384_v52 = vadd.f32 %v2083_v42, %v698_v48  ;;  %v1448_v53 = vadd.f32 %v2083_v42, %v858_v49  ;;  %v700_v54 = vpop.f32.mrb[23].mxu0  ;;  %v860_v55 = vpop.f32.mrb[23].mxu1 }
 0x107   :  { %v1511_v56 = vmax.f32 %v1383_v46, 0.0  ;;  %v1575_v57 = vmax.f32 %v1447_v47, 0.0  ;;  %v1385_v58 = vadd.f32 %v2085_v43, %v700_v54  ;;  %v1449_v59 = vadd.f32 %v2085_v43, %v860_v55 }
 0x108   :  { %1638 = vst [vmem:[#allocation3 + $0xa0] sm:$0xff] %v1510_v50  ;;  %1702 = vst [vmem:[#allocation3 + $0x2a0] sm:$0xff] %v1574_v51  ;;  %v1512_v60 = vmax.f32 %v1384_v52, 0.0  ;;  %v1576_v61 = vmax.f32 %v1448_v53, 0.0 }
 0x109   :  { %1639 = vst [vmem:[#allocation3 + $0xa8] sm:$0xff] %v1511_v56  ;;  %1703 = vst [vmem:[#allocation3 + $0x2a8] sm:$0xff] %v1575_v57  ;;  %v1513_v62 = vmax.f32 %v1385_v58, 0.0  ;;  %v1577_v63 = vmax.f32 %v1449_v59, 0.0 }
 0x10a   :  { %1640 = vst [vmem:[#allocation3 + $0xb0] sm:$0xff] %v1512_v60  ;;  %1704 = vst [vmem:[#allocation3 + $0x2b0] sm:$0xff] %v1576_v61 }
 0x10b   :  { %1641 = vst [vmem:[#allocation3 + $0xb8] sm:$0xff] %v1513_v62  ;;  %1705 = vst [vmem:[#allocation3 + $0x2b8] sm:$0xff] %v1577_v63  ;;  %v704_v0 = vpop.f32.mrb[24].mxu0  ;;  %v864_v1 = vpop.f32.mrb[24].mxu1 }
 0x10c   :  { %v1386_v2 = vadd.f32 %v2083_v42, %v704_v0  ;;  %v1450_v3 = vadd.f32 %v2083_v42, %v864_v1  ;;  %v706_v4 = vpop.f32.mrb[25].mxu0  ;;  %v866_v5 = vpop.f32.mrb[25].mxu1 }
 0x10d   :  { %v1387_v6 = vadd.f32 %v2085_v43, %v706_v4  ;;  %v1451_v7 = vadd.f32 %v2085_v43, %v866_v5  ;;  %v708_v8 = vpop.f32.mrb[26].mxu0  ;;  %v868_v9 = vpop.f32.mrb[26].mxu1 }
 0x10e   :  { %v1514_v10 = vmax.f32 %v1386_v2, 0.0  ;;  %v1578_v11 = vmax.f32 %v1450_v3, 0.0  ;;  %v1388_v12 = vadd.f32 %v2083_v42, %v708_v8  ;;  %v1452_v13 = vadd.f32 %v2083_v42, %v868_v9  ;;  %v710_v14 = vpop.f32.mrb[27].mxu0  ;;  %v870_v15 = vpop.f32.mrb[27].mxu1 }
 0x10f   :  { %v1515_v16 = vmax.f32 %v1387_v6, 0.0  ;;  %v1579_v17 = vmax.f32 %v1451_v7, 0.0  ;;  %v1389_v18 = vadd.f32 %v2085_v43, %v710_v14  ;;  %v1453_v19 = vadd.f32 %v2085_v43, %v870_v15 }
 0x110   :  { %1642 = vst [vmem:[#allocation3 + $0xc0] sm:$0xff] %v1514_v10  ;;  %1706 = vst [vmem:[#allocation3 + $0x2c0] sm:$0xff] %v1578_v11  ;;  %v1516_v20 = vmax.f32 %v1388_v12, 0.0  ;;  %v1580_v21 = vmax.f32 %v1452_v13, 0.0 }
 0x111   :  { %1643 = vst [vmem:[#allocation3 + $0xc8] sm:$0xff] %v1515_v16  ;;  %1707 = vst [vmem:[#allocation3 + $0x2c8] sm:$0xff] %v1579_v17  ;;  %v1517_v22 = vmax.f32 %v1389_v18, 0.0  ;;  %v1581_v23 = vmax.f32 %v1453_v19, 0.0 }
 0x112   :  { %1644 = vst [vmem:[#allocation3 + $0xd0] sm:$0xff] %v1516_v20  ;;  %1708 = vst [vmem:[#allocation3 + $0x2d0] sm:$0xff] %v1580_v21 }
 0x113   :  { %1645 = vst [vmem:[#allocation3 + $0xd8] sm:$0xff] %v1517_v22  ;;  %1709 = vst [vmem:[#allocation3 + $0x2d8] sm:$0xff] %v1581_v23  ;;  %v714_v24 = vpop.f32.mrb[28].mxu0  ;;  %v874_v25 = vpop.f32.mrb[28].mxu1 }
 0x114   :  { %v1390_v26 = vadd.f32 %v2083_v42, %v714_v24  ;;  %v1454_v27 = vadd.f32 %v2083_v42, %v874_v25  ;;  %v716_v28 = vpop.f32.mrb[29].mxu0  ;;  %v876_v29 = vpop.f32.mrb[29].mxu1 }
 0x115   :  { %v1391_v30 = vadd.f32 %v2085_v43, %v716_v28  ;;  %v1455_v31 = vadd.f32 %v2085_v43, %v876_v29  ;;  %v718_v32 = vpop.f32.mrb[30].mxu0  ;;  %v878_v33 = vpop.f32.mrb[30].mxu1 }
 0x116   :  { %v1518_v34 = vmax.f32 %v1390_v26, 0.0  ;;  %v1582_v35 = vmax.f32 %v1454_v27, 0.0  ;;  %v1392_v36 = vadd.f32 %v2083_v42, %v718_v32  ;;  %v1456_v37 = vadd.f32 %v2083_v42, %v878_v33  ;;  %v720_v38 = vpop.f32.mrb[31].mxu0  ;;  %v880_v39 = vpop.f32.mrb[31].mxu1 }
 0x117   :  { %v1519_v40 = vmax.f32 %v1391_v30, 0.0  ;;  %v1583_v41 = vmax.f32 %v1455_v31, 0.0  ;;  %v1393_v44 = vadd.f32 %v2085_v43, %v720_v38  ;;  %v1457_v45 = vadd.f32 %v2085_v43, %v880_v39 }
 0x118   :  { %1646 = vst [vmem:[#allocation3 + $0xe0] sm:$0xff] %v1518_v34  ;;  %1710 = vst [vmem:[#allocation3 + $0x2e0] sm:$0xff] %v1582_v35  ;;  %v1520_v46 = vmax.f32 %v1392_v36, 0.0  ;;  %v1584_v47 = vmax.f32 %v1456_v37, 0.0 }
 0x119   :  { %1647 = vst [vmem:[#allocation3 + $0xe8] sm:$0xff] %v1519_v40  ;;  %1711 = vst [vmem:[#allocation3 + $0x2e8] sm:$0xff] %v1583_v41  ;;  %v1521_v48 = vmax.f32 %v1393_v44, 0.0  ;;  %v1585_v49 = vmax.f32 %v1457_v45, 0.0 }
 0x11a   :  { %1648 = vst [vmem:[#allocation3 + $0xf0] sm:$0xff] %v1520_v46  ;;  %1712 = vst [vmem:[#allocation3 + $0x2f0] sm:$0xff] %v1584_v47 }
 0x11b   :  { %1649 = vst [vmem:[#allocation3 + $0xf8] sm:$0xff] %v1521_v48  ;;  %1713 = vst [vmem:[#allocation3 + $0x2f8] sm:$0xff] %v1585_v49  ;;  %v724_v50 = vpop.f32.mrb[32].mxu0  ;;  %v884_v51 = vpop.f32.mrb[32].mxu1 }
 0x11c   :  { %v1394_v52 = vadd.f32 %v2083_v42, %v724_v50  ;;  %v1458_v53 = vadd.f32 %v2083_v42, %v884_v51  ;;  %v726_v54 = vpop.f32.mrb[33].mxu0  ;;  %v886_v55 = vpop.f32.mrb[33].mxu1 }
 0x11d   :  { %v1395_v56 = vadd.f32 %v2085_v43, %v726_v54  ;;  %v1459_v57 = vadd.f32 %v2085_v43, %v886_v55  ;;  %v728_v58 = vpop.f32.mrb[34].mxu0  ;;  %v888_v59 = vpop.f32.mrb[34].mxu1 }
 0x11e   :  { %v1522_v60 = vmax.f32 %v1394_v52, 0.0  ;;  %v1586_v61 = vmax.f32 %v1458_v53, 0.0  ;;  %v1396_v62 = vadd.f32 %v2083_v42, %v728_v58  ;;  %v1460_v63 = vadd.f32 %v2083_v42, %v888_v59  ;;  %v730_v0 = vpop.f32.mrb[35].mxu0  ;;  %v890_v1 = vpop.f32.mrb[35].mxu1 }
 0x11f   :  { %v1523_v2 = vmax.f32 %v1395_v56, 0.0  ;;  %v1587_v3 = vmax.f32 %v1459_v57, 0.0  ;;  %v1397_v4 = vadd.f32 %v2085_v43, %v730_v0  ;;  %v1461_v5 = vadd.f32 %v2085_v43, %v890_v1 }
 0x120   :  { %1650 = vst [vmem:[#allocation3 + $0x100] sm:$0xff] %v1522_v60  ;;  %1714 = vst [vmem:[#allocation3 + $0x300] sm:$0xff] %v1586_v61  ;;  %v1524_v6 = vmax.f32 %v1396_v62, 0.0  ;;  %v1588_v7 = vmax.f32 %v1460_v63, 0.0 }
 0x121   :  { %1651 = vst [vmem:[#allocation3 + $0x108] sm:$0xff] %v1523_v2  ;;  %1715 = vst [vmem:[#allocation3 + $0x308] sm:$0xff] %v1587_v3  ;;  %v1525_v8 = vmax.f32 %v1397_v4, 0.0  ;;  %v1589_v9 = vmax.f32 %v1461_v5, 0.0 }
 0x122   :  { %1652 = vst [vmem:[#allocation3 + $0x110] sm:$0xff] %v1524_v6  ;;  %1716 = vst [vmem:[#allocation3 + $0x310] sm:$0xff] %v1588_v7 }
 0x123   :  { %1653 = vst [vmem:[#allocation3 + $0x118] sm:$0xff] %v1525_v8  ;;  %1717 = vst [vmem:[#allocation3 + $0x318] sm:$0xff] %v1589_v9  ;;  %v734_v10 = vpop.f32.mrb[36].mxu0  ;;  %v894_v11 = vpop.f32.mrb[36].mxu1 }
 0x124   :  { %v1398_v12 = vadd.f32 %v2083_v42, %v734_v10  ;;  %v1462_v13 = vadd.f32 %v2083_v42, %v894_v11  ;;  %v736_v14 = vpop.f32.mrb[37].mxu0  ;;  %v896_v15 = vpop.f32.mrb[37].mxu1 }
 0x125   :  { %v1399_v16 = vadd.f32 %v2085_v43, %v736_v14  ;;  %v1463_v17 = vadd.f32 %v2085_v43, %v896_v15  ;;  %v738_v18 = vpop.f32.mrb[38].mxu0  ;;  %v898_v19 = vpop.f32.mrb[38].mxu1 }
 0x126   :  { %v1526_v20 = vmax.f32 %v1398_v12, 0.0  ;;  %v1590_v21 = vmax.f32 %v1462_v13, 0.0  ;;  %v1400_v22 = vadd.f32 %v2083_v42, %v738_v18  ;;  %v1464_v23 = vadd.f32 %v2083_v42, %v898_v19  ;;  %v740_v24 = vpop.f32.mrb[39].mxu0  ;;  %v900_v25 = vpop.f32.mrb[39].mxu1 }
 0x127   :  { %v1527_v26 = vmax.f32 %v1399_v16, 0.0  ;;  %v1591_v27 = vmax.f32 %v1463_v17, 0.0  ;;  %v1401_v28 = vadd.f32 %v2085_v43, %v740_v24  ;;  %v1465_v29 = vadd.f32 %v2085_v43, %v900_v25 }
 0x128   :  { %1654 = vst [vmem:[#allocation3 + $0x120] sm:$0xff] %v1526_v20  ;;  %1718 = vst [vmem:[#allocation3 + $0x320] sm:$0xff] %v1590_v21  ;;  %v1528_v30 = vmax.f32 %v1400_v22, 0.0  ;;  %v1592_v31 = vmax.f32 %v1464_v23, 0.0 }
 0x129   :  { %1655 = vst [vmem:[#allocation3 + $0x128] sm:$0xff] %v1527_v26  ;;  %1719 = vst [vmem:[#allocation3 + $0x328] sm:$0xff] %v1591_v27  ;;  %v1529_v32 = vmax.f32 %v1401_v28, 0.0  ;;  %v1593_v33 = vmax.f32 %v1465_v29, 0.0 }
 0x12a   :  { %1656 = vst [vmem:[#allocation3 + $0x130] sm:$0xff] %v1528_v30  ;;  %1720 = vst [vmem:[#allocation3 + $0x330] sm:$0xff] %v1592_v31 }
 0x12b   :  { %1657 = vst [vmem:[#allocation3 + $0x138] sm:$0xff] %v1529_v32  ;;  %1721 = vst [vmem:[#allocation3 + $0x338] sm:$0xff] %v1593_v33  ;;  %v744_v34 = vpop.f32.mrb[40].mxu0  ;;  %v904_v35 = vpop.f32.mrb[40].mxu1 }
 0x12c   :  { %v1402_v36 = vadd.f32 %v2083_v42, %v744_v34  ;;  %v1466_v37 = vadd.f32 %v2083_v42, %v904_v35  ;;  %v746_v38 = vpop.f32.mrb[41].mxu0  ;;  %v906_v39 = vpop.f32.mrb[41].mxu1 }
 0x12d   :  { %v1403_v40 = vadd.f32 %v2085_v43, %v746_v38  ;;  %v1467_v41 = vadd.f32 %v2085_v43, %v906_v39  ;;  %v748_v44 = vpop.f32.mrb[42].mxu0  ;;  %v908_v45 = vpop.f32.mrb[42].mxu1 }
 0x12e   :  { %v1530_v46 = vmax.f32 %v1402_v36, 0.0  ;;  %v1594_v47 = vmax.f32 %v1466_v37, 0.0  ;;  %v1404_v48 = vadd.f32 %v2083_v42, %v748_v44  ;;  %v1468_v49 = vadd.f32 %v2083_v42, %v908_v45  ;;  %v750_v50 = vpop.f32.mrb[43].mxu0  ;;  %v910_v51 = vpop.f32.mrb[43].mxu1 }
 0x12f   :  { %v1531_v52 = vmax.f32 %v1403_v40, 0.0  ;;  %v1595_v53 = vmax.f32 %v1467_v41, 0.0  ;;  %v1405_v54 = vadd.f32 %v2085_v43, %v750_v50  ;;  %v1469_v55 = vadd.f32 %v2085_v43, %v910_v51 }
 0x130   :  { %1658 = vst [vmem:[#allocation3 + $0x140] sm:$0xff] %v1530_v46  ;;  %1722 = vst [vmem:[#allocation3 + $0x340] sm:$0xff] %v1594_v47  ;;  %v1532_v56 = vmax.f32 %v1404_v48, 0.0  ;;  %v1596_v57 = vmax.f32 %v1468_v49, 0.0 }
 0x131   :  { %1659 = vst [vmem:[#allocation3 + $0x148] sm:$0xff] %v1531_v52  ;;  %1723 = vst [vmem:[#allocation3 + $0x348] sm:$0xff] %v1595_v53  ;;  %v1533_v58 = vmax.f32 %v1405_v54, 0.0  ;;  %v1597_v59 = vmax.f32 %v1469_v55, 0.0 }
 0x132   :  { %1660 = vst [vmem:[#allocation3 + $0x150] sm:$0xff] %v1532_v56  ;;  %1724 = vst [vmem:[#allocation3 + $0x350] sm:$0xff] %v1596_v57 }
 0x133   :  { %1661 = vst [vmem:[#allocation3 + $0x158] sm:$0xff] %v1533_v58  ;;  %1725 = vst [vmem:[#allocation3 + $0x358] sm:$0xff] %v1597_v59  ;;  %v754_v60 = vpop.f32.mrb[44].mxu0  ;;  %v914_v61 = vpop.f32.mrb[44].mxu1 }
 0x134   :  { %v1406_v62 = vadd.f32 %v2083_v42, %v754_v60  ;;  %v1470_v63 = vadd.f32 %v2083_v42, %v914_v61  ;;  %v756_v0 = vpop.f32.mrb[45].mxu0  ;;  %v916_v1 = vpop.f32.mrb[45].mxu1 }
 0x135   :  { %v1407_v2 = vadd.f32 %v2085_v43, %v756_v0  ;;  %v1471_v3 = vadd.f32 %v2085_v43, %v916_v1  ;;  %v758_v4 = vpop.f32.mrb[46].mxu0  ;;  %v918_v5 = vpop.f32.mrb[46].mxu1 }
 0x136   :  { %v1534_v6 = vmax.f32 %v1406_v62, 0.0  ;;  %v1598_v7 = vmax.f32 %v1470_v63, 0.0  ;;  %v1408_v8 = vadd.f32 %v2083_v42, %v758_v4  ;;  %v1472_v9 = vadd.f32 %v2083_v42, %v918_v5  ;;  %v760_v10 = vpop.f32.mrb[47].mxu0  ;;  %v920_v11 = vpop.f32.mrb[47].mxu1 }
 0x137   :  { %v1535_v12 = vmax.f32 %v1407_v2, 0.0  ;;  %v1599_v13 = vmax.f32 %v1471_v3, 0.0  ;;  %v1409_v14 = vadd.f32 %v2085_v43, %v760_v10  ;;  %v1473_v15 = vadd.f32 %v2085_v43, %v920_v11 }
 0x138   :  { %1662 = vst [vmem:[#allocation3 + $0x160] sm:$0xff] %v1534_v6  ;;  %1726 = vst [vmem:[#allocation3 + $0x360] sm:$0xff] %v1598_v7  ;;  %v1536_v16 = vmax.f32 %v1408_v8, 0.0  ;;  %v1600_v17 = vmax.f32 %v1472_v9, 0.0 }
 0x139   :  { %1663 = vst [vmem:[#allocation3 + $0x168] sm:$0xff] %v1535_v12  ;;  %1727 = vst [vmem:[#allocation3 + $0x368] sm:$0xff] %v1599_v13  ;;  %v1537_v18 = vmax.f32 %v1409_v14, 0.0  ;;  %v1601_v19 = vmax.f32 %v1473_v15, 0.0 }
 0x13a   :  { %1664 = vst [vmem:[#allocation3 + $0x170] sm:$0xff] %v1536_v16  ;;  %1728 = vst [vmem:[#allocation3 + $0x370] sm:$0xff] %v1600_v17 }
 0x13b   :  { %1665 = vst [vmem:[#allocation3 + $0x178] sm:$0xff] %v1537_v18  ;;  %1729 = vst [vmem:[#allocation3 + $0x378] sm:$0xff] %v1601_v19  ;;  %v764_v20 = vpop.f32.mrb[48].mxu0  ;;  %v924_v21 = vpop.f32.mrb[48].mxu1 }
 0x13c   :  { %v1410_v22 = vadd.f32 %v2083_v42, %v764_v20  ;;  %v1474_v23 = vadd.f32 %v2083_v42, %v924_v21  ;;  %v766_v24 = vpop.f32.mrb[49].mxu0  ;;  %v926_v25 = vpop.f32.mrb[49].mxu1 }
 0x13d   :  { %v1411_v26 = vadd.f32 %v2085_v43, %v766_v24  ;;  %v1475_v27 = vadd.f32 %v2085_v43, %v926_v25  ;;  %v768_v28 = vpop.f32.mrb[50].mxu0  ;;  %v928_v29 = vpop.f32.mrb[50].mxu1 }
 0x13e   :  { %v1538_v30 = vmax.f32 %v1410_v22, 0.0  ;;  %v1602_v31 = vmax.f32 %v1474_v23, 0.0  ;;  %v1412_v32 = vadd.f32 %v2083_v42, %v768_v28  ;;  %v1476_v33 = vadd.f32 %v2083_v42, %v928_v29  ;;  %v770_v34 = vpop.f32.mrb[51].mxu0  ;;  %v930_v35 = vpop.f32.mrb[51].mxu1 }
 0x13f   :  { %v1539_v36 = vmax.f32 %v1411_v26, 0.0  ;;  %v1603_v37 = vmax.f32 %v1475_v27, 0.0  ;;  %v1413_v38 = vadd.f32 %v2085_v43, %v770_v34  ;;  %v1477_v39 = vadd.f32 %v2085_v43, %v930_v35 }
 0x140   :  { %1666 = vst [vmem:[#allocation3 + $0x180] sm:$0xff] %v1538_v30  ;;  %1730 = vst [vmem:[#allocation3 + $0x380] sm:$0xff] %v1602_v31  ;;  %v1540_v40 = vmax.f32 %v1412_v32, 0.0  ;;  %v1604_v41 = vmax.f32 %v1476_v33, 0.0 }
 0x141   :  { %1667 = vst [vmem:[#allocation3 + $0x188] sm:$0xff] %v1539_v36  ;;  %1731 = vst [vmem:[#allocation3 + $0x388] sm:$0xff] %v1603_v37  ;;  %v1541_v44 = vmax.f32 %v1413_v38, 0.0  ;;  %v1605_v45 = vmax.f32 %v1477_v39, 0.0 }
 0x142   :  { %1668 = vst [vmem:[#allocation3 + $0x190] sm:$0xff] %v1540_v40  ;;  %1732 = vst [vmem:[#allocation3 + $0x390] sm:$0xff] %v1604_v41 }
 0x143   :  { %1669 = vst [vmem:[#allocation3 + $0x198] sm:$0xff] %v1541_v44  ;;  %1733 = vst [vmem:[#allocation3 + $0x398] sm:$0xff] %v1605_v45  ;;  %v774_v46 = vpop.f32.mrb[52].mxu0  ;;  %v934_v47 = vpop.f32.mrb[52].mxu1 }
 0x144   :  { %v1414_v48 = vadd.f32 %v2083_v42, %v774_v46  ;;  %v1478_v49 = vadd.f32 %v2083_v42, %v934_v47  ;;  %v776_v50 = vpop.f32.mrb[53].mxu0  ;;  %v936_v51 = vpop.f32.mrb[53].mxu1 }
 0x145   :  { %v1415_v52 = vadd.f32 %v2085_v43, %v776_v50  ;;  %v1479_v53 = vadd.f32 %v2085_v43, %v936_v51  ;;  %v778_v54 = vpop.f32.mrb[54].mxu0  ;;  %v938_v55 = vpop.f32.mrb[54].mxu1 }
 0x146   :  { %v1542_v56 = vmax.f32 %v1414_v48, 0.0  ;;  %v1606_v57 = vmax.f32 %v1478_v49, 0.0  ;;  %v1416_v58 = vadd.f32 %v2083_v42, %v778_v54  ;;  %v1480_v59 = vadd.f32 %v2083_v42, %v938_v55  ;;  %v780_v60 = vpop.f32.mrb[55].mxu0  ;;  %v940_v61 = vpop.f32.mrb[55].mxu1 }
 0x147   :  { %v1543_v62 = vmax.f32 %v1415_v52, 0.0  ;;  %v1607_v63 = vmax.f32 %v1479_v53, 0.0  ;;  %v1417_v0 = vadd.f32 %v2085_v43, %v780_v60  ;;  %v1481_v1 = vadd.f32 %v2085_v43, %v940_v61 }
 0x148   :  { %1670 = vst [vmem:[#allocation3 + $0x1a0] sm:$0xff] %v1542_v56  ;;  %1734 = vst [vmem:[#allocation3 + $0x3a0] sm:$0xff] %v1606_v57  ;;  %v1544_v2 = vmax.f32 %v1416_v58, 0.0  ;;  %v1608_v3 = vmax.f32 %v1480_v59, 0.0 }
 0x149   :  { %1671 = vst [vmem:[#allocation3 + $0x1a8] sm:$0xff] %v1543_v62  ;;  %1735 = vst [vmem:[#allocation3 + $0x3a8] sm:$0xff] %v1607_v63  ;;  %v1545_v4 = vmax.f32 %v1417_v0, 0.0  ;;  %v1609_v5 = vmax.f32 %v1481_v1, 0.0 }
 0x14a   :  { %1672 = vst [vmem:[#allocation3 + $0x1b0] sm:$0xff] %v1544_v2  ;;  %1736 = vst [vmem:[#allocation3 + $0x3b0] sm:$0xff] %v1608_v3 }
 0x14b   :  { %1673 = vst [vmem:[#allocation3 + $0x1b8] sm:$0xff] %v1545_v4  ;;  %1737 = vst [vmem:[#allocation3 + $0x3b8] sm:$0xff] %v1609_v5  ;;  %v784_v6 = vpop.f32.mrb[56].mxu0  ;;  %v944_v7 = vpop.f32.mrb[56].mxu1 }
 0x14c   :  { %v1418_v8 = vadd.f32 %v2083_v42, %v784_v6  ;;  %v1482_v9 = vadd.f32 %v2083_v42, %v944_v7  ;;  %v786_v10 = vpop.f32.mrb[57].mxu0  ;;  %v946_v11 = vpop.f32.mrb[57].mxu1 }
 0x14d   :  { %v1419_v12 = vadd.f32 %v2085_v43, %v786_v10  ;;  %v1483_v13 = vadd.f32 %v2085_v43, %v946_v11  ;;  %v788_v14 = vpop.f32.mrb[58].mxu0  ;;  %v948_v15 = vpop.f32.mrb[58].mxu1 }
 0x14e   :  { %v1546_v16 = vmax.f32 %v1418_v8, 0.0  ;;  %v1610_v17 = vmax.f32 %v1482_v9, 0.0  ;;  %v1420_v18 = vadd.f32 %v2083_v42, %v788_v14  ;;  %v1484_v19 = vadd.f32 %v2083_v42, %v948_v15  ;;  %v790_v20 = vpop.f32.mrb[59].mxu0  ;;  %v950_v21 = vpop.f32.mrb[59].mxu1 }
 0x14f   :  { %v1547_v22 = vmax.f32 %v1419_v12, 0.0  ;;  %v1611_v23 = vmax.f32 %v1483_v13, 0.0  ;;  %v1421_v24 = vadd.f32 %v2085_v43, %v790_v20  ;;  %v1485_v25 = vadd.f32 %v2085_v43, %v950_v21 }
 0x150   :  { %1674 = vst [vmem:[#allocation3 + $0x1c0] sm:$0xff] %v1546_v16  ;;  %1738 = vst [vmem:[#allocation3 + $0x3c0] sm:$0xff] %v1610_v17  ;;  %v1548_v26 = vmax.f32 %v1420_v18, 0.0  ;;  %v1612_v27 = vmax.f32 %v1484_v19, 0.0 }
 0x151   :  { %1675 = vst [vmem:[#allocation3 + $0x1c8] sm:$0xff] %v1547_v22  ;;  %1739 = vst [vmem:[#allocation3 + $0x3c8] sm:$0xff] %v1611_v23  ;;  %v1549_v28 = vmax.f32 %v1421_v24, 0.0  ;;  %v1613_v29 = vmax.f32 %v1485_v25, 0.0 }
 0x152   :  { %1676 = vst [vmem:[#allocation3 + $0x1d0] sm:$0xff] %v1548_v26  ;;  %1740 = vst [vmem:[#allocation3 + $0x3d0] sm:$0xff] %v1612_v27 }
 0x153   :  { %1677 = vst [vmem:[#allocation3 + $0x1d8] sm:$0xff] %v1549_v28  ;;  %1741 = vst [vmem:[#allocation3 + $0x3d8] sm:$0xff] %v1613_v29  ;;  %v794_v30 = vpop.f32.mrb[60].mxu0  ;;  %v954_v31 = vpop.f32.mrb[60].mxu1 }
 0x154   :  { %v1422_v32 = vadd.f32 %v2083_v42, %v794_v30  ;;  %v1486_v33 = vadd.f32 %v2083_v42, %v954_v31  ;;  %v796_v34 = vpop.f32.mrb[61].mxu0  ;;  %v956_v35 = vpop.f32.mrb[61].mxu1 }
 0x155   :  { %v1423_v36 = vadd.f32 %v2085_v43, %v796_v34  ;;  %v1487_v37 = vadd.f32 %v2085_v43, %v956_v35  ;;  %v798_v38 = vpop.f32.mrb[62].mxu0  ;;  %v958_v39 = vpop.f32.mrb[62].mxu1 }
 0x156   :  { %v1550_v40 = vmax.f32 %v1422_v32, 0.0  ;;  %v1614_v41 = vmax.f32 %v1486_v33, 0.0  ;;  %v1424_v44 = vadd.f32 %v2083_v42, %v798_v38  ;;  %v1488_v45 = vadd.f32 %v2083_v42, %v958_v39  ;;  %v800_v46 = vpop.f32.mrb[63].mxu0  ;;  %v960_v47 = vpop.f32.mrb[63].mxu1 }
 0x157   :  { %v1551_v48 = vmax.f32 %v1423_v36, 0.0  ;;  %v1615_v49 = vmax.f32 %v1487_v37, 0.0  ;;  %v1425_v50 = vadd.f32 %v2085_v43, %v800_v46  ;;  %v1489_v51 = vadd.f32 %v2085_v43, %v960_v47 }
 0x158   :  { %1678 = vst [vmem:[#allocation3 + $0x1e0] sm:$0xff] %v1550_v40  ;;  %1742 = vst [vmem:[#allocation3 + $0x3e0] sm:$0xff] %v1614_v41  ;;  %v1552_v52 = vmax.f32 %v1424_v44, 0.0  ;;  %v1616_v53 = vmax.f32 %v1488_v45, 0.0 }
 0x159   :  { %1679 = vst [vmem:[#allocation3 + $0x1e8] sm:$0xff] %v1551_v48  ;;  %1743 = vst [vmem:[#allocation3 + $0x3e8] sm:$0xff] %v1615_v49  ;;  %v1553_v54 = vmax.f32 %v1425_v50, 0.0  ;;  %v1617_v55 = vmax.f32 %v1489_v51, 0.0 }
 0x15a   :  { %1680 = vst [vmem:[#allocation3 + $0x1f0] sm:$0xff] %v1552_v52  ;;  %1744 = vst [vmem:[#allocation3 + $0x3f0] sm:$0xff] %v1616_v53 }
 0x15b   :  { %1681 = vst [vmem:[#allocation3 + $0x1f8] sm:$0xff] %v1553_v54  ;;  %1745 = vst [vmem:[#allocation3 + $0x3f8] sm:$0xff] %v1617_v55 }
 0x15c   :  { %1880 = shalt.err (!%p1877_p4)
}
 0x15d   :  { %s1881_s26 = scalar_lea.hbm %s2230_s3, 16384 }
 0x15e   :  { %p1882_p5 = scmp.ne.s32.totalorder %s2230_s3, %s1881_s26  ;;  %p1885_p6 = scmp.lt.u32.totalorder %s1881_s26, %s2230_s3 }
 0x160   :  { %p1887_p7 = pnand %p1885_p6, %p1882_p5 }
 0x162   :  { %1890 = shalt.err (!%p1887_p7)
}
 0x163   :  { %s1895_s4 = smov 256   ;;  %s1896_s5 = smov 16  }
 0x164   :  { %1757 = dma.vmem_to_hbm [thread:$0]  %s1752_s2, 16384, %s2230_s3, [#allocation4], %s1895_s4, %s1895_s4, %s1896_s5  }
 0x165   :  { %1891 = dma.done.wait [#allocation4], 16384  }
 0x166   :  { %1892 = vsyncadd [#allocation4], 4294950912 }
 0x167   :  { %1761 = vsyncpa [#allocation4], 1 }

</bundles_post_ra>
